<compile_context>
chip_gen: v7x
topology: tpu7x:2x2x1
jax: 0.10.0
libtpu: 0.0.40
codegen_flags: <defaults>
</compile_context>

<pallas_src>
import math
import functools

import jax
import jax.numpy as jnp
import numpy as np
from jax.experimental import pallas as pl
from jax.experimental.pallas import tpu as pltpu


# ---------------------------------------------------------------------------
# Parameter / buffer construction (pure JAX "glue", mirrors torch __init__).
# ---------------------------------------------------------------------------
def make_positional_encoding(d_model: int, max_len: int = 5000, dtype=jnp.float32):
    """Sinusoidal table with the torch buffer shape (max_len, 1, d_model).

    Built once in the model dtype so the forward pass never slices or casts it.
    """
    position = jnp.arange(max_len, dtype=jnp.float32)[:, None]                  # (L, 1)
    div_term = jnp.exp(
        jnp.arange(0, d_model, 2, dtype=jnp.float32) * (-math.log(10000.0) / d_model)
    )                                                                           # (D/2,)
    pe = jnp.zeros((max_len, d_model), dtype=jnp.float32)
    pe = pe.at[:, 0::2].set(jnp.sin(position * div_term))
    pe = pe.at[:, 1::2].set(jnp.cos(position * div_term))
    return pe[:, None, :].astype(dtype)                                         # (L, 1, D)


# ---------------------------------------------------------------------------
# Kernels: x/out blocks are (ts, B, D), pe blocks are (ts, 1, D).
# ---------------------------------------------------------------------------
def _pe_add_kernel(x_ref, pe_ref, o_ref):
    # (ts, B, D) + (ts, 1, D): pe broadcasts over the batch axis in-register.
    o_ref[...] = x_ref[...] + pe_ref[...]


def _pe_add_dropout_kernel(seed_ref, x_ref, pe_ref, o_ref, *, threshold, inv_keep):
    # Training-mode dropout fused with the add: inverted scaling, TPU hardware
    # PRNG, per-tile stream offset so tiles draw independent bits.
    pltpu.prng_seed(seed_ref[0] + pl.program_id(0))
    y = x_ref[...] + pe_ref[...]
    bits = pltpu.bitcast(pltpu.prng_random_bits(y.shape), jnp.int32)
    # keep iff the low 24 random bits >= threshold.  P(keep) = 1 - p quantised
    # to 24 bits (bias <= ~6e-8) while the scale uses the exact 1/(1-p).
    rnd24 = bits & jnp.int32(0x00FFFFFF)          # uniform in [0, 2^24)
    keep = rnd24 >= jnp.int32(threshold)
    o_ref[...] = jnp.where(keep, y * inv_keep, jnp.zeros_like(y)).astype(o_ref.dtype)


# ---------------------------------------------------------------------------
# Tiling / VMEM policy (generation aware).
# ---------------------------------------------------------------------------
_MIN_GRID_STEPS = 8          # >= ~4 tiles per TensorCore on 2-TC parts (v7x)


def _round_up(v, m):
    return (v + m - 1) // m * m


def _vmem_limit_bytes():
    """64 MiB scoped limit on 128-MiB-VMEM parts (v5e/v6e); ~40 MiB on 64-MiB v7x.

    Falls back to the conservative 40 MiB choice if the hardware query is
    unavailable (e.g. CPU interpret mode)."""
    cap = None
    try:
        if jax.default_backend() == "tpu":
            cap = pltpu.get_tpu_info().vmem_capacity_bytes
    except Exception:
        cap = None
    if cap is not None and cap >= 128 * 1024 * 1024:
        return 64 * 1024 * 1024
    return 40 * 1024 * 1024


def _choose_seq_tile(S, B, D, itemsize, vmem_limit, *, training):
    """Largest sequence tile whose pipeline buffers fit comfortably in VMEM."""
    # Padded VMEM footprint per sequence row: minor dims tile to (8*(4/itemsize), 128).
    sub = 8 * max(1, 4 // max(itemsize, 1))
    lane = _round_up(D, 128)
    row_x = _round_up(B, sub) * lane * itemsize      # one x (or out) block row
    row_pe = sub * lane * itemsize                    # one (ts, 1, D) pe block row
    per_row = 2 * (2 * row_x + row_pe)                # double-buffered x + out + pe
    if training:
        # ~2 block-sized 32-bit temporaries (y + random bits) live in the kernel.
        per_row += 2 * _round_up(B, 8) * lane * 4
    budget = vmem_limit // 2                          # leave half for Mosaic slack
    ts = max((budget // per_row) // 8 * 8, 8)
    # Keep enough grid steps to feed both v7x TensorCores / fill the pipeline.
    ts = min(ts, max(8, _round_up(pl.cdiv(S, _MIN_GRID_STEPS), 8)))
    return min(ts, S)


# ---------------------------------------------------------------------------
# Wrapper
# ---------------------------------------------------------------------------
def positional_encoding(x, pe, *, dropout_p: float = 0.1,
                        training: bool = False, seed=0):
    """Apply positional encoding (+ optional dropout) to x of shape (S, B, D).

    pe is the full (max_len, 1, D) table from make_positional_encoding, stored
    in the model dtype (no per-call slice/cast pass).
    """
    S, B, D = x.shape
    L = pe.shape[0]
    assert pe.shape == (L, 1, D) and L >= S, "pe must be (max_len, 1, d_model) with max_len >= seq_len"
    if pe.dtype != x.dtype:                 # fallback only; build pe in model dtype
        pe = pe.astype(x.dtype)

    is_dropout = bool(training) and float(dropout_p) > 0.0
    if is_dropout and float(dropout_p) >= 1.0:
        return jnp.zeros_like(x)            # torch: p=1 drops everything

    itemsize = x.dtype.itemsize
    vmem_limit = _vmem_limit_bytes()
    ts = _choose_seq_tile(S, B, D, itemsize, vmem_limit, training=is_dropout)
    grid = (pl.cdiv(S, ts),)

    cp = pltpu.CompilerParams(
        dimension_semantics=("parallel",),   # independent tiles -> megacore-friendly
        vmem_limit_bytes=vmem_limit,
    )
    out_shape = jax.ShapeDtypeStruct((S, B, D), x.dtype)
    cost = pl.CostEstimate(
        flops=S * B * D,
        transcendentals=0,
        bytes_accessed=(2 * S * B * D + S * D) * itemsize,
    )
    on_tpu = jax.default_backend() == "tpu"

    if not is_dropout:
        # Donating x halves the op's HBM footprint when the caller's buffer is
        # donatable; keep the alias off in the CPU interpreter used for testing.
        io_aliases = {0: 0} if on_tpu else {}
        return pl.pallas_call(
            _pe_add_kernel,
            out_shape=out_shape,
            grid_spec=pltpu.PrefetchScalarGridSpec(
                num_scalar_prefetch=0,
                grid=grid,
                in_specs=[
                    pl.BlockSpec((ts, B, D), lambda i: (i, 0, 0)),
                    pl.BlockSpec((ts, 1, D), lambda i: (i, 0, 0)),
                ],
                out_specs=pl.BlockSpec((ts, B, D), lambda i: (i, 0, 0)),
            ),
            compiler_params=cp,
            cost_estimate=cost,
            input_output_aliases=io_aliases,
        )(x, pe)

    # ---- training: fused dropout (requires real TPU hardware PRNG) ----
    p = float(dropout_p)
    threshold = int(round(p * (1 << 24)))        # keep iff bits_24 >= threshold
    inv_keep = 1.0 / (1.0 - p)
    # Accept a device/traced seed without forcing a host round-trip.
    seed_arr = jnp.asarray(seed, dtype=jnp.int32).reshape((1,))

    return pl.pallas_call(
        functools.partial(_pe_add_dropout_kernel,
                          threshold=threshold, inv_keep=inv_keep),
        out_shape=out_shape,
        grid_spec=pltpu.PrefetchScalarGridSpec(
            num_scalar_prefetch=1,
            grid=grid,
            in_specs=[
                pl.BlockSpec((ts, B, D), lambda i, s: (i, 0, 0)),
                pl.BlockSpec((ts, 1, D), lambda i, s: (i, 0, 0)),
            ],
            out_specs=pl.BlockSpec((ts, B, D), lambda i, s: (i, 0, 0)),
        ),
        compiler_params=cp,
        cost_estimate=cost,
        # TODO(synk): alias x->out here too ({1: 0}; the scalar-prefetch seed
        # shifts x's operand index) once caller-side donation is in place.
    )(seed_arr, x, pe)


# ---------------------------------------------------------------------------
# Main
# ---------------------------------------------------------------------------
if __name__ == "__main__":
    d_model = 32
    seq_len = 8
    batch = 2
    max_len = 64          # small max_len; semantics identical to 5000

    key = jax.random.PRNGKey(0)
    x = jax.random.normal(key, (seq_len, batch, d_model), dtype=jnp.float32)
    pe = make_positional_encoding(d_model, max_len=max_len, dtype=x.dtype)

    # Reference (plain JAX): pe is (L, 1, D) and broadcasts over batch.
    ref = x + pe[:seq_len]

    # Eval-mode forward (dropout = identity), computed in the Pallas kernel.
    out = jax.block_until_ready(
        positional_encoding(x, pe, dropout_p=0.1, training=False))
    np.testing.assert_allclose(np.asarray(out), np.asarray(ref), rtol=1e-6, atol=1e-6)

    # Training-mode forward uses the TPU hardware PRNG, which only lowers on
    # real TPU devices (not in the CPU interpreter) -> gate the check.
    if jax.default_backend() == "tpu":
        p = 0.5
        out_tr = jax.block_until_ready(
            positional_encoding(x, pe, dropout_p=p, training=True, seed=123))
        out_np, ref_np = np.asarray(out_tr), np.asarray(ref)
        kept = out_np != 0.0          # test artifact: a kept exact-zero would flag falsely
        np.testing.assert_allclose(out_np[kept], (ref_np / (1.0 - p))[kept],
                                   rtol=1e-5, atol=1e-5)
        assert 0.2 < float(kept.mean()) < 0.8, "dropout rate implausible"

    print("KERNEL_OK")
</pallas_src>

<mosaic_0001>
module attributes {stable_mosaic.version = 11 : i64} {
  func.func @_pe_add_kernel(%arg0: i32, %arg1: memref<8x2x32xf32, #tpu.memory_space<vmem>>, %arg2: memref<8x1x32xf32, #tpu.memory_space<vmem>>, %arg3: memref<8x2x32xf32, #tpu.memory_space<vmem>>) attributes {dimension_semantics = [#tpu.dimension_semantics<parallel>], iteration_bounds = array<i64: 1>, scalar_prefetch = 0 : i64, scratch_operands = 0 : i64, tpu.core_type = #tpu.core_type<tc>, window_params = [{transform_indices = @transform_0, window_bounds = array<i64: 8, 2, 32>}, {transform_indices = @transform_1, window_bounds = array<i64: 8, 1, 32>}, {transform_indices = @transform_2, window_bounds = array<i64: 8, 2, 32>}]} {
    %c0 = arith.constant 0 : index
    %c0_0 = arith.constant 0 : index
    %c0_1 = arith.constant 0 : index
    %0 = vector.load %arg1[%c0, %c0_0, %c0_1] : memref<8x2x32xf32, #tpu.memory_space<vmem>>, vector<8x2x32xf32>
    %c0_2 = arith.constant 0 : index
    %c0_3 = arith.constant 0 : index
    %c0_4 = arith.constant 0 : index
    %1 = vector.load %arg2[%c0_2, %c0_3, %c0_4] : memref<8x1x32xf32, #tpu.memory_space<vmem>>, vector<8x1x32xf32>
    %2 = vector.broadcast %1 : vector<8x1x32xf32> to vector<8x2x32xf32>
    %3 = arith.addf %0, %2 : vector<8x2x32xf32>
    %c0_5 = arith.constant 0 : index
    %c0_6 = arith.constant 0 : index
    %c0_7 = arith.constant 0 : index
    %4 = vector.load %arg3[%c0_5, %c0_6, %c0_7] : memref<8x2x32xf32, #tpu.memory_space<vmem>>, vector<8x2x32xf32>
    tpu.vector_store %arg3[%c0_5, %c0_6, %c0_7], %3 {strides = array<i32>} : memref<8x2x32xf32, #tpu.memory_space<vmem>>, vector<8x2x32xf32>,
    return
  }
  func.func @transform_0(%arg0: i32) -> (i32, i32, i32) {
    %c0_i32 = arith.constant 0 : i32
    %c0_i32_0 = arith.constant 0 : i32
    %c0_i32_1 = arith.constant 0 : i32
    return %arg0, %c0_i32, %c0_i32_0 : i32, i32, i32
  }
  func.func @transform_1(%arg0: i32) -> (i32, i32, i32) {
    %c0_i32 = arith.constant 0 : i32
    %c0_i32_0 = arith.constant 0 : i32
    %c0_i32_1 = arith.constant 0 : i32
    return %arg0, %c0_i32, %c0_i32_0 : i32, i32, i32
  }
  func.func @transform_2(%arg0: i32) -> (i32, i32, i32) {
    %c0_i32 = arith.constant 0 : i32
    %c0_i32_0 = arith.constant 0 : i32
    %c0_i32_1 = arith.constant 0 : i32
    return %arg0, %c0_i32, %c0_i32_0 : i32, i32, i32
  }
}

</mosaic_0001>

<bundles_post_ra>
// kernel: tpu_custom_call.1
= control target key start
LH: loop header
LB: loop body
LE: loop exit
PB: predicated region body
PF: predicated region fallthrough
CT: control target
= control target key end

     0   :  { %vm84_vm0 = vcmask 254976   ;;  %s230_s0 = inlined_call_operand.vmem [shape: f32[8,2,32], index: 0, kind: input, shape index: {}]   ;;  %s231_s1 = inlined_call_operand.vmem [shape: f32[64,1,32], index: 1, kind: input, shape index: {}]   ;;  %s232_s2 = inlined_call_operand.hbm [shape: f32[8,2,32], index: 2, kind: output, shape index: {}]  }
   0x1   :  { %v12_v0 = vld [vmem:[%s230_s0] sm:$0x3]  ;;  %v13_v3 = vld [vmem:[%s230_s0 + $0x2] sm:$0x3]  ;;  %v14_v5 = vld [vmem:[%s230_s0 + $0x4] sm:$0x3] }
   0x2   :  { %v109_v1 = vld [vmem:[%s231_s1] ss:$0 sm:$0xff]  ;;  %v110_v4 = vld [vmem:[%s231_s1 + $0x1] ss:$0 sm:$0xff]  ;;  %v111_v7 = vld [vmem:[%s231_s1 + $0x2] ss:$0 sm:$0xff] }
   0x3   :  { %v76_v2 = vadd.f32 %v109_v1, %v12_v0  ;;  %v77_v6 = vadd.f32 %v110_v4, %v13_v3  ;;  %v15_v8 = vld [vmem:[%s230_s0 + $0x6] sm:$0x3]  ;;  %v112_v9 = vld [vmem:[%s231_s1 + $0x3] ss:$0 sm:$0xff]  ;;  %v78_v10 = vadd.f32 %v111_v7, %v14_v5  ;;  %v16_v12 = vld [vmem:[%s230_s0 + $0x8] sm:$0x3] }
   0x4   :  { %v79_v11 = vadd.f32 %v112_v9, %v15_v8  ;;  %v113_v13 = vld [vmem:[%s231_s1 + $0x4] ss:$0 sm:$0xff]  ;;  %v17_v14 = vld [vmem:[%s230_s0 + $0xa] sm:$0x3]  ;;  %v114_v16 = vld [vmem:[%s231_s1 + $0x5] ss:$0 sm:$0xff] }
   0x5   :  { %85 = vst.msk [vmem:[#allocation2] sm:$0x3] %vm84_vm0, %v76_v2  ;;  %86 = vst.msk [vmem:[#allocation2 + $0x2] sm:$0x3] %vm84_vm0, %v77_v6  ;;  %v80_v15 = vadd.f32 %v113_v13, %v16_v12  ;;  %v18_v17 = vld [vmem:[%s230_s0 + $0xc] sm:$0x3]  ;;  %v81_v19 = vadd.f32 %v114_v16, %v17_v14 }
   0x6   :  { %v115_v18 = vld [vmem:[%s231_s1 + $0x6] ss:$0 sm:$0xff]  ;;  %87 = vst.msk [vmem:[#allocation2 + $0x4] sm:$0x3] %vm84_vm0, %v78_v10  ;;  %88 = vst.msk [vmem:[#allocation2 + $0x6] sm:$0x3] %vm84_vm0, %v79_v11 }
   0x7   :  { %v82_v20 = vadd.f32 %v115_v18, %v18_v17  ;;  %v19_v21 = vld [vmem:[%s230_s0 + $0xe] sm:$0x3]  ;;  %v116_v22 = vld [vmem:[%s231_s1 + $0x7] ss:$0 sm:$0xff] }
   0x8   :  { %7 = vsyncpa [#allocation3], 0  ;;  %89 = vst.msk [vmem:[#allocation2 + $0x8] sm:$0x3] %vm84_vm0, %v80_v15  ;;  %v83_v23 = vadd.f32 %v116_v22, %v19_v21  ;;  %s144_s13 = smov [#allocation2]  }
   0x9   :  { %s98_s14 = sshll.u32 %s144_s13, 4  ;;  %90 = vst.msk [vmem:[#allocation2 + $0xa] sm:$0x3] %vm84_vm0, %v81_v19  ;;  %91 = vst.msk [vmem:[#allocation2 + $0xc] sm:$0x3] %vm84_vm0, %v82_v20  ;;  %s99_s14 = int_to_ptr.vmem [resolvable:$true] %s98_s14 }
   0xa   :  { %92 = vst.msk [vmem:[#allocation2 + $0xe] sm:$0x3] %vm84_vm0, %v83_v23  ;;  %s120_s15 = scalar_lea.vmem %s99_s14, 256  ;;  %p125_p1 = scmp.lt.s32.totalorder %s99_s14, %s99_s14 }
   0xb   :  { %p121_p0 = scmp.ne.s32.totalorder %s99_s14, %s120_s15  ;;  %p126_p2 = scmp.lt.s32.totalorder %s120_s15, %s120_s15 }
   0xd   :  { %p127_p3 = por %p126_p2, %p125_p1 }
   0xf   :  { %p128_p4 = pnand %p127_p3, %p121_p0 }
  0x11   :  { %131 = shalt.err (!%p128_p4)
}
  0x12   :  { %s132_s16 = scalar_lea.hbm %s232_s2, 256 }
  0x13   :  { %p133_p5 = scmp.ne.s32.totalorder %s232_s2, %s132_s16  ;;  %p136_p6 = scmp.lt.u32.totalorder %s132_s16, %s232_s2 }
  0x15   :  { %p138_p7 = pnand %p136_p6, %p133_p5 }
  0x17   :  { %141 = shalt.err (!%p138_p7)
}
  0x18   :  { %s145_s21 = smov 32   ;;  %s146_s22 = smov 2  }
  0x19   :  { %104 = dma.vmem_to_hbm [thread:$0]  %s99_s14, 256, %s232_s2, [#allocation3], %s145_s21, %s145_s21, %s146_s22  }
  0x1a   :  { %142 = dma.done.wait [#allocation3], 256  }
  0x1b   :  { %143 = vsyncadd [#allocation3], 4294967040 }
  0x1c   :  { %108 = vsyncpa [#allocation3], 1 }

</bundles_post_ra>
